<compile_context>
chip_gen: v6e
topology: v6e:2x2x1
jax: 0.10.0
libtpu: 0.0.40
codegen_flags: <defaults>
</compile_context>

<pallas_src>
import functools

import jax
import jax.numpy as jnp
from jax.experimental import pallas as pl
from jax.experimental.pallas import tpu as pltpu


def _round_up(n: int, m: int) -> int:
    return ((n + m - 1) // m) * m


def _mse_partial_kernel(x_ref, t_ref, o_ref, *, tile_rows, valid_rows, needs_mask):
    """Per-tile partial sum of (x - t)^2, folded to an (8, lanes) block."""
    d = x_ref[...].astype(jnp.float32) - t_ref[...].astype(jnp.float32)
    if needs_mask:
        # Ragged last tile: rows past `valid_rows` hold stale / undefined data
        # from the clipped edge DMA -> zero them BEFORE squaring.
        row = jax.lax.broadcasted_iota(jnp.int32, d.shape, 0) + pl.program_id(0) * tile_rows
        d = jnp.where(row < valid_rows, d, 0.0)
    sq = d * d
    tr, lanes = sq.shape
    # Sublane fold: (tr, lanes) -> (tr//8, 8, lanes); axis-0 sum is pure
    # vreg-wise VPU adds, hidden under the tile DMA.
    o_ref[...] = jnp.sum(sq.reshape(tr // 8, 8, lanes), axis=0)


def content_loss_forward(x, target, *, tile_bytes=4 << 20, buffer_count=None):
    """Returns (input_passthrough, mse_loss) mirroring ContentLoss.forward."""
    assert x.shape == target.shape, "input/target shapes must match"
    total = int(x.size)
    itemsize = jnp.dtype(x.dtype).itemsize

    xf = x.reshape(-1)
    tf = target.reshape(-1)

    # Lane width: largest multiple of 128 dividing `total`, so the flat
    # reshape below is a copy-free view.  Only if `total` is not a multiple
    # of 128 do we fall back to a tiny zero-pad (< 128 extra elements).
    lanes = None
    for cand in (512, 256, 128):
        if total % cand == 0:
            lanes = cand
            break
    if lanes is None:
        # Last-resort fallback (rare for NST feature maps): zero padding in
        # both operands contributes 0 to the sum.
        lanes = 128
        padded_total = _round_up(total, lanes)
        xf = jnp.pad(xf, (0, padded_total - total))
        tf = jnp.pad(tf, (0, padded_total - total))
    else:
        padded_total = total

    rows = padded_total // lanes
    xf = xf.reshape(rows, lanes)
    tf = tf.reshape(rows, lanes)

    # Tile rows: target ~tile_bytes of HBM traffic per input per grid step
    # (bf16 automatically gets 2x the rows).  Multiple of 16 keeps the
    # in-kernel (tr//8, 8, lanes) fold and bf16 sublane packing clean.
    tr = max(16, (tile_bytes // (lanes * itemsize)) // 16 * 16)
    tr = min(tr, _round_up(rows, 16))
    num_tiles = -(-rows // tr)
    # Keep >= 2 grid steps when the data allows it so v7x's two TensorCores
    # both get work ("parallel" grid axis); neutral on v5e / v6e.
    if num_tiles == 1 and rows >= 32:
        tr = _round_up(-(-rows // 2), 16)
        num_tiles = -(-rows // tr)
    needs_mask = (rows % tr) != 0

    kernel = functools.partial(
        _mse_partial_kernel, tile_rows=tr, valid_rows=rows, needs_mask=needs_mask
    )

    # Optional deeper input pipeline (sweep 2 vs 3 on v7x); default = standard
    # double-buffering, no pipeline_mode kwarg.
    bs_kwargs = {}
    if buffer_count is not None and buffer_count != 2:
        bs_kwargs = dict(pipeline_mode=pl.Buffered(int(buffer_count)))
    in_spec = pl.BlockSpec((tr, lanes), lambda i: (i, 0), **bs_kwargs)

    nbuf = int(buffer_count) if buffer_count else 2
    pipeline_bytes = nbuf * (2 * tr * lanes * itemsize + 8 * lanes * 4)
    vmem_limit = int(min(96 << 20, max(32 << 20, pipeline_bytes + (8 << 20))))

    out_rows = num_tiles * 8
    partials = pl.pallas_call(
        kernel,
        out_shape=jax.ShapeDtypeStruct((out_rows, lanes), jnp.float32),
        grid_spec=pltpu.PrefetchScalarGridSpec(
            num_scalar_prefetch=0,
            grid=(num_tiles,),
            in_specs=[in_spec, in_spec],
            out_specs=pl.BlockSpec((8, lanes), lambda i: (i, 0)),
        ),
        compiler_params=pltpu.CompilerParams(
            # Each grid step writes its own output block -> no cross-step
            # dependency -> safe to shard across TensorCores (v7x megacore).
            dimension_semantics=("parallel",),
            vmem_limit_bytes=vmem_limit,
        ),
        cost_estimate=pl.CostEstimate(
            flops=3 * rows * lanes,
            transcendentals=0,
            bytes_accessed=2 * rows * lanes * itemsize + out_rows * lanes * 4,
        ),
    )(xf, tf)

    # Tiny final (second-level) reduction + mean in plain JAX; padded / masked
    # elements contributed 0, so divide by the true element count.
    loss = jnp.sum(partials) / jnp.float32(total)
    # TODO(synk): PyTorch stores the loss on `self.loss`; no Pallas/JAX
    # equivalent of mutable module state, so it is returned alongside the
    # unchanged passthrough input.
    return x, loss


if __name__ == "__main__":
    key = jax.random.PRNGKey(0)
    k1, k2, k3, k4, k5, k6, k7, k8 = jax.random.split(key, 8)

    fwd = jax.jit(content_loss_forward)

    # Case 1: small NCHW feature map (copy-free path, single ragged tile
    # masked in-kernel).  batch=2, channels=4, spatial=16x16.
    x = jax.random.normal(k1, (2, 4, 16, 16), dtype=jnp.float32)
    t = jax.random.normal(k2, (2, 4, 16, 16), dtype=jnp.float32)  # "detached" target
    out, loss = fwd(x, t)
    jax.block_until_ready((out, loss))
    ref = jnp.mean((x - t) ** 2)
    assert jnp.allclose(loss, ref, rtol=1e-6, atol=1e-6), (loss, ref)
    assert jnp.array_equal(out, x)  # forward returns the input unchanged

    # Case 2: element count not a multiple of 128 (exercises pad fallback).
    x2 = jax.random.normal(k3, (1, 3, 14, 14), dtype=jnp.float32)
    t2 = jax.random.normal(k4, (1, 3, 14, 14), dtype=jnp.float32)
    out2, loss2 = fwd(x2, t2)
    jax.block_until_ready((out2, loss2))
    ref2 = jnp.mean((x2 - t2) ** 2)
    assert jnp.allclose(loss2, ref2, rtol=1e-6, atol=1e-6), (loss2, ref2)
    assert jnp.array_equal(out2, x2)

    # Case 3: larger map -> multi-tile grid, no masking needed, both TCs
    # (on v7x) get a tile.
    x3 = jax.random.normal(k5, (4, 64, 32, 32), dtype=jnp.float32)
    t3 = jax.random.normal(k6, (4, 64, 32, 32), dtype=jnp.float32)
    out3, loss3 = fwd(x3, t3)
    jax.block_until_ready((out3, loss3))
    ref3 = jnp.mean((x3 - t3) ** 2)
    assert jnp.allclose(loss3, ref3, rtol=1e-5, atol=1e-6), (loss3, ref3)
    assert jnp.array_equal(out3, x3)

    # Case 4: bf16 inputs (tile-rows double automatically; accumulation in f32).
    x4 = jax.random.normal(k7, (2, 8, 16, 16), dtype=jnp.float32).astype(jnp.bfloat16)
    t4 = jax.random.normal(k8, (2, 8, 16, 16), dtype=jnp.float32).astype(jnp.bfloat16)
    out4, loss4 = fwd(x4, t4)
    jax.block_until_ready((out4, loss4))
    ref4 = jnp.mean((x4.astype(jnp.float32) - t4.astype(jnp.float32)) ** 2)
    assert jnp.allclose(loss4, ref4, rtol=1e-5, atol=1e-6), (loss4, ref4)
    assert jnp.array_equal(out4, x4)

    print("KERNEL_OK")
</pallas_src>

<mosaic_0001>
module attributes {stable_mosaic.version = 11 : i64} {
  func.func @_mse_partial_kernel(%arg0: i32, %arg1: memref<16x512xf32, #tpu.memory_space<vmem>>, %arg2: memref<16x512xf32, #tpu.memory_space<vmem>>, %arg3: memref<8x512xf32, #tpu.memory_space<vmem>>) attributes {dimension_semantics = [#tpu.dimension_semantics<parallel>], iteration_bounds = array<i64: 1>, scalar_prefetch = 0 : i64, scratch_operands = 0 : i64, tpu.core_type = #tpu.core_type<tc>, window_params = [{transform_indices = @transform_0, window_bounds = array<i64: 16, 512>}, {transform_indices = @transform_1, window_bounds = array<i64: 16, 512>}, {transform_indices = @transform_2, window_bounds = array<i64: 8, 512>}]} {
    %c0 = arith.constant 0 : index
    %c0_0 = arith.constant 0 : index
    %0 = vector.load %arg1[%c0, %c0_0] : memref<16x512xf32, #tpu.memory_space<vmem>>, vector<16x512xf32>
    %c0_1 = arith.constant 0 : index
    %c0_2 = arith.constant 0 : index
    %1 = vector.load %arg2[%c0_1, %c0_2] : memref<16x512xf32, #tpu.memory_space<vmem>>, vector<16x512xf32>
    %2 = arith.subf %0, %1 : vector<16x512xf32>
    %3 = tpu.iota {dimensions = array<i32: 0>} : vector<16x512xi32>
    %c16_i32 = arith.constant 16 : i32
    %4 = arith.muli %arg0, %c16_i32 : i32
    %5 = vector.broadcast %4 : i32 to vector<16x512xi32>
    %6 = arith.addi %3, %5 : vector<16x512xi32>
    %c4_i32 = arith.constant 4 : i32
    %7 = vector.broadcast %c4_i32 : i32 to vector<16x512xi32>
    %8 = arith.cmpi slt, %6, %7 : vector<16x512xi32>
    %cst = arith.constant 0.000000e+00 : f32
    %9 = vector.broadcast %cst : f32 to vector<16x512xf32>
    %10 = arith.select %8, %2, %9 : vector<16x512xi1>, vector<16x512xf32>
    %11 = arith.mulf %10, %10 : vector<16x512xf32>
    %12 = vector.shape_cast %11 : vector<16x512xf32> to vector<2x8x512xf32>
    %cst_3 = arith.constant dense<0.000000e+00> : vector<8x512xf32>
    %13 = vector.multi_reduction <add>, %12, %cst_3 [0] : vector<2x8x512xf32> to vector<8x512xf32>
    %c0_4 = arith.constant 0 : index
    %c0_5 = arith.constant 0 : index
    %14 = vector.load %arg3[%c0_4, %c0_5] : memref<8x512xf32, #tpu.memory_space<vmem>>, vector<8x512xf32>
    tpu.vector_store %arg3[%c0_4, %c0_5], %13 {strides = array<i32>} : memref<8x512xf32, #tpu.memory_space<vmem>>, vector<8x512xf32>,
    return
  }
  func.func @transform_0(%arg0: i32) -> (i32, i32) {
    %c0_i32 = arith.constant 0 : i32
    %c0_i32_0 = arith.constant 0 : i32
    return %arg0, %c0_i32 : i32, i32
  }
  func.func @transform_1(%arg0: i32) -> (i32, i32) {
    %c0_i32 = arith.constant 0 : i32
    %c0_i32_0 = arith.constant 0 : i32
    return %arg0, %c0_i32 : i32, i32
  }
  func.func @transform_2(%arg0: i32) -> (i32, i32) {
    %c0_i32 = arith.constant 0 : i32
    %c0_i32_0 = arith.constant 0 : i32
    return %arg0, %c0_i32 : i32, i32
  }
}

</mosaic_0001>

<bundles_post_ra>
// kernel: content_loss_forward.1
= control target key start
LH: loop header
LB: loop body
LE: loop exit
PB: predicated region body
PF: predicated region fallthrough
CT: control target
= control target key end

     0   :  { %v35_v0 = vlaneseq  ;;  %s147_s0 = inlined_call_operand.vmem [shape: f32[4,512], index: 0, kind: input, shape index: {}]   ;;  %s148_s1 = inlined_call_operand.vmem [shape: f32[4,512], index: 1, kind: input, shape index: {}]   ;;  %s149_s2 = inlined_call_operand.vmem [shape: f32[8,512], index: 2, kind: output, shape index: {}]  }
   0x1   :  { %v11_v1 = vld [vmem:[%s147_s0] sm:$0xff]  ;;  %v13_v2 = vld [vmem:[%s147_s0 + $0x10] sm:$0xff]  ;;  %v12_v7 = vld [vmem:[%s147_s0 + $0x8] sm:$0xff] }
   0x2   :  { %v19_v3 = vld [vmem:[%s148_s1] sm:$0xff]  ;;  %v21_v4 = vld [vmem:[%s148_s1 + $0x10] sm:$0xff]  ;;  %v36_v6 = vshrl.u32 %v35_v0, 7  ;;  %v14_v8 = vld [vmem:[%s147_s0 + $0x18] sm:$0xff] }
   0x3   :  { %v27_v5 = vsub.f32 %v11_v1, %v19_v3  ;;  %v29_v9 = vsub.f32 %v13_v2, %v21_v4  ;;  %v20_v10 = vld [vmem:[%s148_s1 + $0x8] sm:$0xff]  ;;  %v22_v11 = vld [vmem:[%s148_s1 + $0x18] sm:$0xff] }
   0x4   :  { %vm42_vm0 = vcmp.lt.s32.totalorder %v36_v6, 4  ;;  %v28_v12 = vsub.f32 %v12_v7, %v20_v10  ;;  %v30_v13 = vsub.f32 %v14_v8, %v22_v11 }
   0x5   :  { %v52_v14 = vcombine.low %v27_v5, %v29_v9  ;;  %v53_v15 = vcombine.high %v27_v5, %v29_v9 }
   0x6   :  { %v54_v16 = vcombine.low %v28_v12, %v30_v13  ;;  %v55_v17 = vcombine.high %v28_v12, %v30_v13 }
   0x7   :  { %v68_v18 = vsel %vm42_vm0, %v52_v14, 0.0  ;;  %v69_v19 = vsel %vm42_vm0, %v53_v15, 0.0 }
   0x8   :  { %v76_v20 = vmul.f32 %v68_v18, %v68_v18  ;;  %v77_v21 = vmul.f32 %v69_v19, %v69_v19  ;;  %v70_v22 = vsel %vm42_vm0, %v54_v16, 0.0  ;;  %v71_v23 = vsel %vm42_vm0, %v55_v17, 0.0 }
   0x9   :  { %v78_v24 = vmul.f32 %v70_v22, %v70_v22  ;;  %v79_v25 = vmul.f32 %v71_v23, %v71_v23 }
   0xa   :  { %88 = vst [vmem:[%s149_s2] sm:$0xff] %v76_v20  ;;  %89 = vst [vmem:[%s149_s2 + $0x8] sm:$0xff] %v77_v21 }
   0xb   :  { %90 = vst [vmem:[%s149_s2 + $0x10] sm:$0xff] %v78_v24  ;;  %91 = vst [vmem:[%s149_s2 + $0x18] sm:$0xff] %v79_v25 }

</bundles_post_ra>
